<compile_context>
chip_gen: v7x
topology: tpu7x:2x2x1
jax: 0.10.0
libtpu: 0.0.40
codegen_flags: <defaults>
</compile_context>

<pallas_src>
import jax
import jax.numpy as jnp
from jax import lax
from jax.experimental import pallas as pl
from jax.experimental.pallas import tpu as pltpu

_SQRT_2_OVER_PI = 0.7978845608028654  # math.sqrt(2.0 / math.pi)
_C1 = 2.0 * _SQRT_2_OVER_PI           # coefficient of x in 2*z
_C2 = _C1 * 0.044715                  # coefficient of x^3 in 2*z


def _new_gelu_f32(x):
    # 0.5*x*(1 + tanh(sqrt(2/pi)*(x + 0.044715*x^3)))  ==  x * sigmoid(2*z)
    # with 2*z = x*(_C1 + _C2*x^2).  Fewer VALU ops; sigmoid runs on the EUP.
    return x * jax.nn.sigmoid(x * (_C1 + _C2 * (x * x)))


def _new_gelu_ref(x):
    # Exact tanh form (as in the PyTorch module) for the reference path.
    return 0.5 * x * (1.0 + jnp.tanh(_SQRT_2_OVER_PI * (x + 0.044715 * (x * x * x))))


def _mlp_kernel_bias(x_ref, w1_ref, b1_ref, w2_ref, b2_ref, o_ref, acc_ref):
    # x_ref: (br, D), w1_ref: (th, D)  [PyTorch layout slab of W_fc],
    # b1_ref: (1, th), w2_ref: (D, th) [slab of W_proj], b2_ref: (1, D),
    # o_ref: (br, D), acc_ref: (br, D) f32 scratch.
    k = pl.program_id(1)

    @pl.when(k == 0)
    def _():
        acc_ref[...] = jnp.zeros_like(acc_ref)

    x = x_ref[...]
    # h_slab = x @ W_fc[k_slab]^T   (contract D with D; native-dtype MXU feed)
    h = lax.dot_general(x, w1_ref[...], (((1,), (1,)), ((), ())),
                        preferred_element_type=jnp.float32)
    h = _new_gelu_f32(h + b1_ref[...].astype(jnp.float32))
    h = h.astype(x_ref.dtype)  # native-dtype feed for the second MXU pass
    # acc += h_slab @ W_proj[:, k_slab]^T   (contract th with th)
    acc_ref[...] += lax.dot_general(h, w2_ref[...], (((1,), (1,)), ((), ())),
                                    preferred_element_type=jnp.float32)

    @pl.when(k == pl.num_programs(1) - 1)
    def _():
        y = acc_ref[...] + b2_ref[...].astype(jnp.float32)
        o_ref[...] = y.astype(o_ref.dtype)


def _mlp_kernel_nobias(x_ref, w1_ref, w2_ref, o_ref, acc_ref):
    k = pl.program_id(1)

    @pl.when(k == 0)
    def _():
        acc_ref[...] = jnp.zeros_like(acc_ref)

    x = x_ref[...]
    h = lax.dot_general(x, w1_ref[...], (((1,), (1,)), ((), ())),
                        preferred_element_type=jnp.float32)
    h = _new_gelu_f32(h)
    h = h.astype(x_ref.dtype)
    acc_ref[...] += lax.dot_general(h, w2_ref[...], (((1,), (1,)), ((), ())),
                                    preferred_element_type=jnp.float32)

    @pl.when(k == pl.num_programs(1) - 1)
    def _():
        o_ref[...] = acc_ref[...].astype(o_ref.dtype)


def _round_up(a, m):
    return (a + m - 1) // m * m


def _pick_block_h(H):
    # Largest 128-multiple slab (<= 2048) that divides H; keeps the MXU fed
    # with 256+ wide tiles on v6e/v7x for real model sizes (H = 4*n_embd).
    for cand in (2048, 1024, 512, 256, 128):
        if H % cand == 0:
            return cand
    return H


def _vmem_capacity_bytes():
    try:
        return int(pltpu.get_tpu_info().vmem_capacity_bytes)
    except Exception:
        return 64 << 20  # conservative fallback (v7x per-TensorCore)


def mlp_forward(x, w_fc, b_fc, w_proj, b_proj, *, block_rows=256, block_h=None):
    """nanoGPT MLP forward.

    x      : (..., D)
    w_fc   : (H, D)  PyTorch Linear layout (out_features, in_features), H = 4*D
    b_fc   : (H,) or None
    w_proj : (D, H)  PyTorch Linear layout
    b_proj : (D,) or None
    """
    orig_shape = x.shape
    D = orig_shape[-1]
    H = w_fc.shape[0]
    assert w_fc.shape == (H, D) and w_proj.shape == (D, H)

    x2 = x.reshape(-1, D)
    R = x2.shape[0]

    # Sublane alignment: 8 rows for 4-byte dtypes, 16 for 2-byte dtypes.
    sub = 16 if x.dtype.itemsize == 2 else 8
    br = max(sub, min(block_rows, _round_up(R, sub)))
    br = _round_up(br, sub)
    # Keep >=2 row blocks when possible so the "parallel" row axis can be
    # sharded across v7x's two TensorCores (decode / small batch*seq).
    while R >= 2 * sub and _round_up(R, br) // br < 2 and br > sub:
        br = max(sub, _round_up(br // 2, sub))
    R_pad = _round_up(R, br)
    if R_pad != R:
        x2 = jnp.pad(x2, ((0, R_pad - R), (0, 0)))

    th = block_h if block_h is not None else _pick_block_h(H)
    assert H % th == 0
    grid = (R_pad // br, H // th)

    has_bias = b_fc is not None
    if has_bias:
        assert b_proj is not None
        inputs = (x2, w_fc, b_fc.reshape(1, H), w_proj, b_proj.reshape(1, D))
        in_specs = [
            pl.BlockSpec((br, D), lambda i, k: (i, 0)),   # x rows
            pl.BlockSpec((th, D), lambda i, k: (k, 0)),   # W_fc slab (PyTorch layout)
            pl.BlockSpec((1, th), lambda i, k: (0, k)),   # b_fc slab
            pl.BlockSpec((D, th), lambda i, k: (0, k)),   # W_proj slab (PyTorch layout)
            pl.BlockSpec((1, D), lambda i, k: (0, 0)),    # b_proj
        ]
        kernel = _mlp_kernel_bias
    else:
        inputs = (x2, w_fc, w_proj)
        in_specs = [
            pl.BlockSpec((br, D), lambda i, k: (i, 0)),
            pl.BlockSpec((th, D), lambda i, k: (k, 0)),
            pl.BlockSpec((D, th), lambda i, k: (0, 0 if H == th else k)),
        ] if False else [
            pl.BlockSpec((br, D), lambda i, k: (i, 0)),
            pl.BlockSpec((th, D), lambda i, k: (k, 0)),
            pl.BlockSpec((D, th), lambda i, k: (0, k)),
        ]
        kernel = _mlp_kernel_nobias

    # VMEM budget: double-buffered x/out row tiles + double-buffered weight
    # slabs + f32 accumulator + f32 h-slab intermediate.  Cap with headroom
    # below the physical capacity of the current chip generation.
    itemsize = x.dtype.itemsize
    w_item = w_fc.dtype.itemsize
    est = 2 * br * D * itemsize                 # x tile, double-buffered
    est += 2 * br * D * itemsize                # out tile, double-buffered
    est += 2 * (th * D + D * th) * w_item       # weight slabs, double-buffered
    if has_bias:
        est += 2 * (th + D) * b_fc.dtype.itemsize
    est += br * D * 4                           # f32 accumulator scratch
    est += br * th * 4                          # f32 h slab intermediate
    cap = (100 << 20) if _vmem_capacity_bytes() >= (128 << 20) else (48 << 20)
    vmem_limit = int(min(max(2 * est, 32 << 20), cap))

    out = pl.pallas_call(
        kernel,
        out_shape=jax.ShapeDtypeStruct((R_pad, D), x.dtype),
        grid_spec=pltpu.PrefetchScalarGridSpec(
            num_scalar_prefetch=0,
            grid=grid,
            in_specs=in_specs,
            out_specs=pl.BlockSpec((br, D), lambda i, k: (i, 0)),
            scratch_shapes=[pltpu.VMEM((br, D), jnp.float32)],
        ),
        compiler_params=pltpu.CompilerParams(
            dimension_semantics=("parallel", "arbitrary"),
            vmem_limit_bytes=vmem_limit,
        ),
    )(*inputs)

    if R_pad != R:
        out = out[:R]
    return out.reshape(orig_shape)


def _mlp_reference(x, w_fc, b_fc, w_proj, b_proj):
    xf = x.astype(jnp.float32)
    h = xf @ w_fc.astype(jnp.float32).T
    if b_fc is not None:
        h = h + b_fc.astype(jnp.float32)
    h = _new_gelu_ref(h)
    y = h @ w_proj.astype(jnp.float32).T
    if b_proj is not None:
        y = y + b_proj.astype(jnp.float32)
    return y.astype(x.dtype)


if __name__ == "__main__":
    key = jax.random.PRNGKey(0)
    B, T, D = 2, 8, 32          # small shapes: batch=2, seq=8, hidden=32
    H = 4 * D                   # 128 (lane-dense expansion)

    k_x, k_w1, k_b1, k_w2, k_b2 = jax.random.split(key, 5)
    x = jax.random.normal(k_x, (B, T, D), dtype=jnp.float32)
    # GPT-style init (initializer_range=0.02), PyTorch Linear layout (out, in).
    w_fc = 0.02 * jax.random.normal(k_w1, (H, D), dtype=jnp.float32)
    b_fc = 0.02 * jax.random.normal(k_b1, (H,), dtype=jnp.float32)
    w_proj = 0.02 * jax.random.normal(k_w2, (D, H), dtype=jnp.float32)
    b_proj = 0.02 * jax.random.normal(k_b2, (D,), dtype=jnp.float32)

    # 1) Bias path, f32 (mlp_bias=True, the config default).
    y = jax.block_until_ready(mlp_forward(x, w_fc, b_fc, w_proj, b_proj))
    y_ref = _mlp_reference(x, w_fc, b_fc, w_proj, b_proj)
    assert y.shape == x.shape and y.dtype == x.dtype
    assert jnp.allclose(y, y_ref, atol=1e-3, rtol=1e-3), "bias path mismatch vs reference"

    # 2) No-bias path (mlp_bias=False) exercises the specialized kernel.
    y_nb = jax.block_until_ready(mlp_forward(x, w_fc, None, w_proj, None))
    y_nb_ref = _mlp_reference(x, w_fc, None, w_proj, None)
    assert jnp.allclose(y_nb, y_nb_ref, atol=1e-3, rtol=1e-3), "no-bias path mismatch"

    # 3) Row-padding path (R not a multiple of the row block).
    x_odd = jax.random.normal(k_x, (3, 5, D), dtype=jnp.float32)
    y_odd = jax.block_until_ready(mlp_forward(x_odd, w_fc, b_fc, w_proj, b_proj))
    y_odd_ref = _mlp_reference(x_odd, w_fc, b_fc, w_proj, b_proj)
    assert jnp.allclose(y_odd, y_odd_ref, atol=1e-3, rtol=1e-3), "padded-rows mismatch"

    # 4) bf16 path: native bf16 MXU feeds with f32 accumulation (looser tol).
    xb = x.astype(jnp.bfloat16)
    w1b, b1b = w_fc.astype(jnp.bfloat16), b_fc.astype(jnp.bfloat16)
    w2b, b2b = w_proj.astype(jnp.bfloat16), b_proj.astype(jnp.bfloat16)
    yb = jax.block_until_ready(mlp_forward(xb, w1b, b1b, w2b, b2b))
    yb_ref = _mlp_reference(xb, w1b, b1b, w2b, b2b)
    assert yb.dtype == jnp.bfloat16
    assert jnp.allclose(yb.astype(jnp.float32), yb_ref.astype(jnp.float32),
                        atol=2e-2, rtol=2e-2), "bf16 path mismatch"

    print("KERNEL_OK")
</pallas_src>

<mosaic_0001>
module attributes {stable_mosaic.version = 11 : i64} {
  func.func @_mlp_kernel_bias(%arg0: i32, %arg1: i32, %arg2: memref<8x32xf32, #tpu.memory_space<vmem>>, %arg3: memref<128x32xf32, #tpu.memory_space<vmem>>, %arg4: memref<1x128xf32, #tpu.memory_space<vmem>>, %arg5: memref<32x128xf32, #tpu.memory_space<vmem>>, %arg6: memref<1x32xf32, #tpu.memory_space<vmem>>, %arg7: memref<8x32xf32, #tpu.memory_space<vmem>>, %arg8: memref<8x32xf32, #tpu.memory_space<vmem>>) attributes {dimension_semantics = [#tpu.dimension_semantics<parallel>, #tpu.dimension_semantics<arbitrary>], iteration_bounds = array<i64: 2, 1>, scalar_prefetch = 0 : i64, scratch_operands = 1 : i64, tpu.core_type = #tpu.core_type<tc>, window_params = [{transform_indices = @transform_0, window_bounds = array<i64: 8, 32>}, {transform_indices = @transform_1, window_bounds = array<i64: 128, 32>}, {transform_indices = @transform_2, window_bounds = array<i64: 1, 128>}, {transform_indices = @transform_3, window_bounds = array<i64: 32, 128>}, {pipeline_mode = #tpu.pipeline_mode<synchronous>, transform_indices = @transform_4, window_bounds = array<i64: 1, 32>}, {transform_indices = @transform_5, window_bounds = array<i64: 8, 32>}]} {
    %c0_i32 = arith.constant 0 : i32
    %0 = arith.cmpi eq, %arg1, %c0_i32 : i32
    %1 = arith.extui %0 : i1 to i32
    %c0_i32_0 = arith.constant 0 : i32
    %2 = arith.cmpi ne, %1, %c0_i32_0 : i32
    scf.if %2 {
      %cst_18 = arith.constant 0.000000e+00 : f32
      %29 = vector.broadcast %cst_18 : f32 to vector<8x32xf32>
      %c0_19 = arith.constant 0 : index
      %c0_20 = arith.constant 0 : index
      %30 = vector.load %arg8[%c0_19, %c0_20] : memref<8x32xf32, #tpu.memory_space<vmem>>, vector<8x32xf32>
      tpu.vector_store %arg8[%c0_19, %c0_20], %29 {strides = array<i32>} : memref<8x32xf32, #tpu.memory_space<vmem>>, vector<8x32xf32>,
    } else {
    }
    %c0 = arith.constant 0 : index
    %c0_1 = arith.constant 0 : index
    %3 = vector.load %arg2[%c0, %c0_1] : memref<8x32xf32, #tpu.memory_space<vmem>>, vector<8x32xf32>
    %c0_2 = arith.constant 0 : index
    %c0_3 = arith.constant 0 : index
    %4 = vector.load %arg3[%c0_2, %c0_3] : memref<128x32xf32, #tpu.memory_space<vmem>>, vector<128x32xf32>
    %cst = arith.constant dense<0.000000e+00> : vector<8x128xf32>
    %5 = tpu.matmul %3, %4, %cst {dimension_numbers = #tpu.dot_dimension_numbers<[1], [1], [0], [0], [0, 0, 1, 0], [], []>} : vector<8x32xf32>, vector<128x32xf32>, vector<8x128xf32> -> vector<8x128xf32>
    %c0_4 = arith.constant 0 : index
    %c0_5 = arith.constant 0 : index
    %6 = vector.load %arg4[%c0_4, %c0_5] : memref<1x128xf32, #tpu.memory_space<vmem>>, vector<1x128xf32>
    %7 = vector.broadcast %6 : vector<1x128xf32> to vector<8x128xf32>
    %8 = arith.addf %5, %7 : vector<8x128xf32>
    %9 = arith.mulf %8, %8 : vector<8x128xf32>
    %cst_6 = arith.constant 0.0713548139 : f32
    %10 = vector.broadcast %cst_6 : f32 to vector<8x128xf32>
    %11 = arith.mulf %10, %9 : vector<8x128xf32>
    %cst_7 = arith.constant 1.59576917 : f32
    %12 = vector.broadcast %cst_7 : f32 to vector<8x128xf32>
    %13 = arith.addf %12, %11 : vector<8x128xf32>
    %14 = arith.mulf %8, %13 : vector<8x128xf32>
    %15 = arith.negf %14 : vector<8x128xf32>
    %16 = math.exp %15 : vector<8x128xf32>
    %cst_8 = arith.constant 1.000000e+00 : f32
    %17 = vector.broadcast %cst_8 : f32 to vector<8x128xf32>
    %18 = arith.addf %17, %16 : vector<8x128xf32>
    %19 = arith.divf %17, %18 : vector<8x128xf32>
    %20 = arith.mulf %8, %19 : vector<8x128xf32>
    %c0_9 = arith.constant 0 : index
    %c0_10 = arith.constant 0 : index
    %21 = vector.load %arg8[%c0_9, %c0_10] : memref<8x32xf32, #tpu.memory_space<vmem>>, vector<8x32xf32>
    %c0_11 = arith.constant 0 : index
    %c0_12 = arith.constant 0 : index
    %22 = vector.load %arg5[%c0_11, %c0_12] : memref<32x128xf32, #tpu.memory_space<vmem>>, vector<32x128xf32>
    %cst_13 = arith.constant dense<0.000000e+00> : vector<8x32xf32>
    %23 = tpu.matmul %20, %22, %cst_13 {dimension_numbers = #tpu.dot_dimension_numbers<[1], [1], [0], [0], [0, 0, 1, 0], [], []>} : vector<8x128xf32>, vector<32x128xf32>, vector<8x32xf32> -> vector<8x32xf32>
    %24 = arith.addf %21, %23 : vector<8x32xf32>
    %c0_14 = arith.constant 0 : index
    %c0_15 = arith.constant 0 : index
    %25 = vector.load %arg8[%c0_14, %c0_15] : memref<8x32xf32, #tpu.memory_space<vmem>>, vector<8x32xf32>
    tpu.vector_store %arg8[%c0_14, %c0_15], %24 {strides = array<i32>} : memref<8x32xf32, #tpu.memory_space<vmem>>, vector<8x32xf32>,
    %c0_i32_16 = arith.constant 0 : i32
    %26 = arith.cmpi eq, %arg1, %c0_i32_16 : i32
    %27 = arith.extui %26 : i1 to i32
    %c0_i32_17 = arith.constant 0 : i32
    %28 = arith.cmpi ne, %27, %c0_i32_17 : i32
    scf.if %28 {
      %c0_18 = arith.constant 0 : index
      %c0_19 = arith.constant 0 : index
      %29 = vector.load %arg8[%c0_18, %c0_19] : memref<8x32xf32, #tpu.memory_space<vmem>>, vector<8x32xf32>
      %c0_20 = arith.constant 0 : index
      %c0_21 = arith.constant 0 : index
      %30 = vector.load %arg6[%c0_20, %c0_21] : memref<1x32xf32, #tpu.memory_space<vmem>>, vector<1x32xf32>
      %31 = vector.broadcast %30 : vector<1x32xf32> to vector<8x32xf32>
      %32 = arith.addf %29, %31 : vector<8x32xf32>
      %c0_22 = arith.constant 0 : index
      %c0_23 = arith.constant 0 : index
      %33 = vector.load %arg7[%c0_22, %c0_23] : memref<8x32xf32, #tpu.memory_space<vmem>>, vector<8x32xf32>
      tpu.vector_store %arg7[%c0_22, %c0_23], %32 {strides = array<i32>} : memref<8x32xf32, #tpu.memory_space<vmem>>, vector<8x32xf32>,
    } else {
    }
    return
  }
  func.func @transform_0(%arg0: i32, %arg1: i32) -> (i32, i32) {
    %c0_i32 = arith.constant 0 : i32
    %c0_i32_0 = arith.constant 0 : i32
    return %arg0, %c0_i32 : i32, i32
  }
  func.func @transform_1(%arg0: i32, %arg1: i32) -> (i32, i32) {
    %c0_i32 = arith.constant 0 : i32
    %c0_i32_0 = arith.constant 0 : i32
    return %arg1, %c0_i32 : i32, i32
  }
  func.func @transform_2(%arg0: i32, %arg1: i32) -> (i32, i32) {
    %c0_i32 = arith.constant 0 : i32
    %c0_i32_0 = arith.constant 0 : i32
    return %c0_i32, %arg1 : i32, i32
  }
  func.func @transform_3(%arg0: i32, %arg1: i32) -> (i32, i32) {
    %c0_i32 = arith.constant 0 : i32
    %c0_i32_0 = arith.constant 0 : i32
    return %c0_i32, %arg1 : i32, i32
  }
  func.func @transform_4(%arg0: i32, %arg1: i32) -> (i32, i32) {
    %c0_i32 = arith.constant 0 : i32
    %c0_i32_0 = arith.constant 0 : i32
    %c0_i32_1 = arith.constant 0 : i32
    return %c0_i32, %c0_i32_0 : i32, i32
  }
  func.func @transform_5(%arg0: i32, %arg1: i32) -> (i32, i32) {
    %c0_i32 = arith.constant 0 : i32
    %c0_i32_0 = arith.constant 0 : i32
    return %arg0, %c0_i32 : i32, i32
  }
}

</mosaic_0001>

<bundles_post_ra>
// kernel: tpu_custom_call.1
= control target key start
LH: loop header
LB: loop body
LE: loop exit
PB: predicated region body
PF: predicated region fallthrough
CT: control target
= control target key end

     0   :  { %10 = vsyncpa [#allocation4], 0  ;;  %s1181_s0 = inlined_call_operand.vmem [shape: f32[16,32], index: 0, kind: input, shape index: {}]   ;;  %s1182_s1 = inlined_call_operand.vmem [shape: f32[128,32], index: 1, kind: input, shape index: {}]   ;;  %s1183_s2 = inlined_call_operand.vmem [shape: f32[1,128], index: 2, kind: input, shape index: {}]   ;;  %s1184_s3 = inlined_call_operand.vmem [shape: f32[32,128], index: 3, kind: input, shape index: {}]   ;;  %s1185_s4 = inlined_call_operand.vmem [shape: f32[1,32], index: 4, kind: input, shape index: {}]   ;;  %s1186_s5 = inlined_call_operand.hbm [shape: f32[16,32], index: 5, kind: output, shape index: {}]  }
   0x1   :  { %12 = vsyncpa [#allocation4 + $0x1], 0  ;;  %s977_s18 = smov 0   ;;  %s979_s19 = smov 0  }
   0x2   :  { %s981_s20 = smov 0   ;;  %s983_s21 = smov 0  }
   0x3   :  { %s985_s22 = smov 0   ;;  %s987_s23 = smov 0  }
   0x4 LB: > { %s661_s24 = sadd.s32 4294967295, %s941_s23   ;;  %s662_s25 = sadd.s32 4294967294, %s941_s23   ;;  %s941_s23 = sphi %s987_s23, %s18_s23   ;;  %s937_s22 = sphi %s985_s22, %s1195_s22   ;;  %s933_s21 = sphi %s983_s21, %s1194_s21   ;;  %s929_s20 = sphi %s981_s20, %s1193_s20   ;;  %s925_s19 = sphi %s979_s19, %s1192_s19   ;;  %s921_s18 = sphi %s977_s18, %s1191_s18  }
   0x5   : > { %s30_s26 = sadd.s32 1, %s937_s22  ;;  %s162_s27 = sadd.s32 1, %s929_s20 }
   0x6   : > { %p32_p0 = scmp.ge.s32.totalorder %s30_s26, 2  ;;  %p172_p1 = scmp.ne.s32.totalorder %s929_s20, %s925_s19 }
   0x7   : > { %p173_p2 = scmp.eq.s32.totalorder %s661_s24, 1  ;;  %p178_p3 = scmp.ne.s32.totalorder %s925_s19, %s921_s18 }
   0x8   : > { %s1197_s26 = smov (%p32_p0, %s30_s26), 0  ;;  %p179_p5 = scmp.eq.s32.totalorder %s662_s25, 1 }
   0x9   : > { %p1017_p4 = por %p173_p2, %p172_p1  ;;  %s159_s29 = ssub.s32 %s937_s22, %s1197_s26 }
   0xa   : > { %p668_p6 = scmp.ge.s32.totalorder %s941_s23, 1  ;;  %p160_p7 = scmp.eq.s32.totalorder %s159_s29, 0 }
   0xb   : > { %p1024_p8 = por %p179_p5, %p178_p3  ;;  %p229_p9 = scmp.lt.s32.totalorder %s941_s23, 3 }
   0xc   : > { %s1030_s6 = scalar_select %p160_p7, %s929_s20, %s162_s27  }
   0xd   : > { %p230_p10 = pnand %p668_p6, %p229_p9 }
   0xe   : > { %vm289_vm0 = vcmask (!%p230_p10), 261120   ;;  %v292_v0 = vld [vmem:[%s1182_s1] sm:$0xff] (!%p230_p10)  ;;  %v293_v1 = vld [vmem:[%s1182_s1 + $0x8] sm:$0xff] (!%p230_p10)  ;;  %v943_v2 = vmov (!%p230_p10), 0.0|0.0   ;;  %v944_v5 = vmov (!%p230_p10), 0.0   ;;  %vm945_vm2 = vmmov (!%p230_p10), 0  }
   0xf   : > { %233 = sbr.rel (%p230_p10) target bundleno = 568 (0x238), region = 40  ;;  %763 = vmatprep.subr.bf16.mxu0 (!%p230_p10), %v943_v2  ;;  %v764_v3 = vpack.c.bf16 (!%p230_p10), %v293_v1, %v292_v0  ;;  %vm1040_vm1 = vmpackc.low (!%p230_p10), %vm289_vm0, %vm289_vm0  ;;  %290 = vst.msk [vmem:[#allocation2] sm:$0xff] (!%p230_p10), %vm289_vm0, %v944_v5  ;;  %795 = vmatprep.subr.bf16.mxu1 (!%p230_p10), %v943_v2  ;;  %v294_v6 = vld [vmem:[%s1182_s1 + $0x10] sm:$0xff] (!%p230_p10)  ;;  %v295_v7 = vld [vmem:[%s1182_s1 + $0x18] sm:$0xff] (!%p230_p10)  ;;  %p268_p11 = scmp.lt.s32.totalorder (!%p230_p10), %s933_s21, 1 }
  0x10   : > { %749 = vmatprep.mubr.msk.f32.mxu0 (!%p230_p10), %vm945_vm2, %v944_v5  ;;  %760 = vmatprep.mubr.msk.f32.mxu1 (!%p230_p10), %vm945_vm2, %v944_v5  ;;  %v768_v8 = vpack.c.bf16 (!%p230_p10), %v295_v7, %v294_v6  ;;  %v296_v9 = vld [vmem:[%s1182_s1 + $0x20] sm:$0xff] (!%p230_p10)  ;;  %v297_v10 = vld [vmem:[%s1182_s1 + $0x28] sm:$0xff] (!%p230_p10)  ;;  %v298_v12 = vld [vmem:[%s1182_s1 + $0x30] sm:$0xff] (!%p230_p10) }
  0x11   : > { %766 = vmatpush3.bf16.xpose.msk.msra.mxu0 (!%p230_p10), %vm1040_vm1, %v764_v3  ;;  %v772_v11 = vpack.c.bf16 (!%p230_p10), %v297_v10, %v296_v9  ;;  %v299_v13 = vld [vmem:[%s1182_s1 + $0x38] sm:$0xff] (!%p230_p10)  ;;  %v300_v15 = vld [vmem:[%s1182_s1 + $0x40] sm:$0xff] (!%p230_p10)  ;;  %v301_v16 = vld [vmem:[%s1182_s1 + $0x48] sm:$0xff] (!%p230_p10) }
  0x12   : > { %767 = vmatprep.subr.bf16.mxu0 (!%p230_p10), %v943_v2  ;;  %v776_v14 = vpack.c.bf16 (!%p230_p10), %v299_v13, %v298_v12  ;;  %v780_v17 = vpack.c.bf16 (!%p230_p10), %v301_v16, %v300_v15  ;;  %v302_v18 = vld [vmem:[%s1182_s1 + $0x50] sm:$0xff] (!%p230_p10)  ;;  %v303_v19 = vld [vmem:[%s1182_s1 + $0x58] sm:$0xff] (!%p230_p10)  ;;  %v304_v21 = vld [vmem:[%s1182_s1 + $0x60] sm:$0xff] (!%p230_p10) }
  0x13   : > { %v784_v20 = vpack.c.bf16 (!%p230_p10), %v303_v19, %v302_v18  ;;  %v305_v22 = vld [vmem:[%s1182_s1 + $0x68] sm:$0xff] (!%p230_p10)  ;;  %v306_v24 = vld [vmem:[%s1182_s1 + $0x70] sm:$0xff] (!%p230_p10)  ;;  %v307_v25 = vld [vmem:[%s1182_s1 + $0x78] sm:$0xff] (!%p230_p10) }
  0x14   : > { %v788_v23 = vpack.c.bf16 (!%p230_p10), %v305_v22, %v304_v21  ;;  %v792_v26 = vpack.c.bf16 (!%p230_p10), %v307_v25, %v306_v24  ;;  %v449_v28 = vld [vmem:[%s1184_s3] sm:$0xff] (!%p230_p10)  ;;  %v450_v29 = vld [vmem:[%s1184_s3 + $0x8] sm:$0xff] (!%p230_p10)  ;;  %v451_v31 = vld [vmem:[%s1184_s3 + $0x10] sm:$0xff] (!%p230_p10) }
  0x15   : > { %v796_v30 = vpack.c.bf16 (!%p230_p10), %v450_v29, %v449_v28  ;;  %v452_v32 = vld [vmem:[%s1184_s3 + $0x18] sm:$0xff] (!%p230_p10)  ;;  %v671_v34 = vld [vmem:[%s1183_s2] ss:$0 sm:$0xff] (!%p230_p10) }
  0x16   : > { %s269_s9 = scalar_select %p268_p11, %s933_s21, 1  ;;  %v799_v33 = vpack.c.bf16 %v452_v32, %v451_v31  ;;  %v448_v47 = vld [vmem:[#allocation2] sm:$0xff] }
  0x17   : > { %797 = vmatpush3.bf16.xpose.msra.mxu1 %v796_v30  ;;  %v690_v51 = vld [vmem:[%s1185_s4] ss:$0 sm:$0xff] }
  0x18   : > { %s670_s10 = sshll.u32 %s269_s9, 3  ;;  %798 = vmatprep.subr.bf16.mxu1 %v943_v2  ;;  %s265_s9 = sand.u32 1, %s925_s19  }
  0x19   : > { %770 = vmatpush3.bf16.xpose.msk.msra.mxu0 %vm1040_vm1, %v768_v8  ;;  %s271_s13 = scalar_lea.vmem %s1181_s0, %s670_s10  ;;  %s669_s10 = sshll.u32 %s265_s9, 3 }
  0x1a   : > { %771 = vmatprep.subr.bf16.mxu0 %v943_v2  ;;  %v291_v27 = vld [vmem:[%s271_s13] sm:$0xff]  ;;  %s692_s13 = sshll.u32 %s933_s21, 7  ;;  %s267_s14 = scalar_lea.vmem [#allocation3], %s669_s10 }
  0x1b   : > { %s552_s15 = sshll.u32 %s267_s14, 4  ;;  %s1133_s24 = scalar_lea.hbm %s1186_s5, %s692_s13  ;;  %s1135_s15 = int_to_ptr.vmem [resolvable:$true] %s552_s15 }
  0x1c   : > { %s539_s25 = scalar_lea.sflag [#allocation4], %s265_s9  ;;  %s863_s27 = scalar_lea.vmem %s1135_s15, 128 }
  0x1d   : > { %p864_p12 = scmp.ne.s32.totalorder %s1135_s15, %s863_s27  ;;  %s946_s21 = smov [#allocation3]  }
  0x1e   : > { %s867_s29 = sshll.u32 %s946_s21, 4  ;;  %s868_s29 = int_to_ptr.vmem [resolvable:$false] %s867_s29 }
  0x1f   : > { %800 = vmatpush3.bf16.xpose.msra.mxu1 %v799_v33  ;;  %p865_p13 = pnand %p864_p12, %p1017_p4  ;;  %s869_s7 = scalar_lea.vmem %s868_s29, 256 }
  0x20   : > { %p870_p1 = scmp.lt.s32.totalorder %s1135_s15, %s868_s29  ;;  %p871_p2 = scmp.lt.s32.totalorder %s869_s7, %s863_s27 }
  0x21   : > { %774 = vmatpush3.bf16.xpose.msk.msra.mxu0 %vm1040_vm1, %v772_v11  ;;  %p866_p0 = pneg %p865_p13 }
  0x22   : > { %775 = vmatprep.subr.bf16.mxu0 %v943_v2  ;;  %p872_p3 = por %p871_p2, %p870_p1 }
  0x24   : > { %p873_p5 = pnand %p872_p3, %p866_p0 }
  0x29   : > { %778 = vmatpush3.bf16.xpose.msk.msra.mxu0 %vm1040_vm1, %v776_v14 }
  0x2a   : > { %779 = vmatprep.subr.bf16.mxu0 %v943_v2 }
  0x31   : > { %782 = vmatpush3.bf16.xpose.msk.msra.mxu0 %vm1040_vm1, %v780_v17 }
  0x32   : > { %783 = vmatprep.subr.bf16.mxu0 %v943_v2 }
  0x39   : > { %786 = vmatpush3.bf16.xpose.msk.msra.mxu0 %vm1040_vm1, %v784_v20 }
  0x3a   : > { %787 = vmatprep.subr.bf16.mxu0 %v943_v2 }
  0x41   : > { %790 = vmatpush3.bf16.xpose.msk.msra.mxu0 %vm1040_vm1, %v788_v23 }
  0x42   : > { %791 = vmatprep.subr.bf16.mxu0 %v943_v2 }
  0x49   : > { %794 = vmatpush3.bf16.xpose.msk.msra.mxu0 %vm1040_vm1, %v792_v26 }
  0x50   : > { %750 = vmatmul.mubr.msk.f32.vlgmr.msra.gmra.mrb[0].mxu0 %vm289_vm0, %v291_v27 }
 0x123   : > { %v433_v35 = vpop.f32.mrb[0].mxu0 }
 0x124   : > { %v434_v36 = vadd.f32 %v671_v34, %v433_v35  ;;  %v751_v37 = vpop.f32.mrb[1].mxu0 }
 0x126   : > { %v437_v38 = vmul.f32 %v434_v36, %v434_v36 }
 0x128   : > { %v438_v39 = vmul.f32 0.071354814, %v437_v38 }
 0x12a   : > { %v439_v40 = vadd.f32 1.5957692, %v438_v39 }
 0x12c   : > { %v440_v41 = vmul.f32 %v439_v40, %v434_v36 }
 0x12e   : > { %v689_v42 = vmul.f32 -1.442695, %v440_v41 }
 0x130   : > { %859 = vpow2.f32 %v689_v42 }
 0x13a   : > { %v860_v43 = vpop.eup %859 }
 0x13b   : > { %v444_v44 = vadd.f32 1.0, %v860_v43 }
 0x13d   : > { %861 = vrcp.f32 %v444_v44 }
 0x147   : > { %v862_v45 = vpop.eup %861 }
 0x148   : > { %v447_v46 = vmul.f32 %v862_v45, %v434_v36 }
 0x14a   : > { %761 = vmatmul.mubr.f32.vlgmr.msra.gmra.mrb[0].mxu1 %v447_v46 }
 0x21d   : > { %v519_v48 = vpop.f32.mrb[0].mxu1 }
 0x21e   : > { %v523_v49 = vadd.f32 %v519_v48, %v448_v47  ;;  %v762_v50 = vpop.f32.mrb[1].mxu1 }
 0x220   : > { %524 = vst.msk [vmem:[#allocation2] sm:$0xff] %vm289_vm0, %v523_v49 }
 0x227   : > { %v528_v52 = vld [vmem:[#allocation2] sm:$0xff] }
 0x228   : > { %v536_v53 = vadd.f32 %v690_v51, %v528_v52 }
 0x22a   : > { %537 = vst.msk [vmem:[%s267_s14] sm:$0xff] %vm289_vm0, %v536_v53 }
 0x22b   : > { %876 = shalt.err (!%p873_p5)
}
 0x22c   : > { %s877_s8 = scalar_lea.hbm %s1133_s24, 128  ;;  %s881_s11 = scalar_lea.hbm %s1186_s5, 256 }
 0x22d   : > { %p878_p6 = scmp.ne.s32.totalorder %s1133_s24, %s877_s8  ;;  %p882_p10 = scmp.lt.u32.totalorder %s1133_s24, %s1186_s5 }
 0x22e   : > { %p883_p11 = scmp.lt.u32.totalorder %s881_s11, %s877_s8  ;;  %p885_p13 = scmp.lt.u32.totalorder %s877_s8, %s1133_s24 }
 0x22f   : > { %p879_p7 = pnand %p878_p6, %p1017_p4 }
 0x230   : > { %p884_p12 = por %p883_p11, %p882_p10 }
 0x231   : > { %p880_p9 = pneg %p879_p7 }
 0x232   : > { %p886_p0 = por %p885_p13, %p884_p12 }
 0x234   : > { %p887_p1 = pnand %p886_p0, %p880_p9 }
 0x236   : > { %890 = shalt.err (!%p887_p1)
}
 0x237   : > { %801 = dma.vmem_to_hbm [thread:$0]  (%p1017_p4), %s1135_s15, 128, %s1133_s24, %s539_s25  }
 0x238 PF: > { %p807_p2 = scmp.ge.s32.totalorder %s941_s23, 2  ;;  %s564_s14 = sand.u32 1, %s921_s18  }
 0x239   : > { %s565_s16 = scalar_lea.sflag [#allocation4], %s564_s14 }
 0x23a   : > { %p804_p3 = pnand %p807_p2, %p1024_p8 }
 0x23c   : > { %916 = dma.done.wait (!%p804_p3), %s565_s16, 128  }
 0x23d   : > { %918 = vsyncadd (!%p804_p3), %s565_s16, 4294967168  ;;  %s18_s23 = sadd.s32 1, %s941_s23   ;;  %s1191_s18 = smov %s925_s19 }
 0x23e   : > { %p15_p5 = scmp.ge.s32.totalorder %s18_s23, 4   ;;  %s1192_s19 = smov %s929_s20 }
 0x23f   : > { %s1193_s20 = smov %s1030_s6  ;;  %s1194_s21 = smov %s937_s22 }
 0x240   : > { %s1195_s22 = smov %s1197_s26  ;;  %17 = sbr.rel (!%p15_p5) target bundleno = 4 (0x4), region = 92 }
 0x247   :  { %570 = vsyncpa [#allocation4], 1 }
 0x248   :  { %572 = vsyncpa [#allocation4 + $0x1], 1 }

</bundles_post_ra>
